<compile_context>
chip_gen: v7x
topology: tpu7x:2x2x1
jax: 0.10.0
libtpu: 0.0.40
codegen_flags: <defaults>
</compile_context>

<pallas_src>
import functools

import jax
import jax.numpy as jnp
from jax.experimental import pallas as pl
from jax.experimental.pallas import tpu as pltpu

_BN_EPS = 1e-5


# ----------------------------- Pallas kernels ------------------------------- #
def _conv_stats_kernel(x_ref, w_ref, y_ref, sum_ref, sq_ref, acc_sum, acc_sq):
    """y_tile = W @ x_tile (bf16 MXU, f32 acc); accumulate per-channel sum/sumsq."""
    i = pl.program_id(0)

    @pl.when(i == 0)
    def _():
        acc_sum[...] = jnp.zeros_like(acc_sum)
        acc_sq[...] = jnp.zeros_like(acc_sq)

    xb = x_ref[...].astype(jnp.bfloat16)           # (Kin, TR)  R on the lane axis
    wb = w_ref[...].astype(jnp.bfloat16)           # (Cout, Kin)
    y = jnp.dot(wb, xb, preferred_element_type=jnp.float32)   # (Cout, TR)
    y_ref[...] = y.astype(y_ref.dtype)

    acc_sum[...] += jnp.sum(y, axis=1, keepdims=True)          # (Cout, 1)
    acc_sq[...] += jnp.sum(y * y, axis=1, keepdims=True)
    sum_ref[...] = acc_sum[...]
    sq_ref[...] = acc_sq[...]


def _bn_relu_conv_stats_kernel(y_ref, w_ref, sc_ref, sh_ref,
                               o_ref, sum_ref, sq_ref, acc_sum, acc_sq,
                               *, valid_cols, tile_r):
    """h = relu(y*scale + shift) (prev-stage BN), y2 = W @ h, accumulate y2 stats."""
    i = pl.program_id(0)

    @pl.when(i == 0)
    def _():
        acc_sum[...] = jnp.zeros_like(acc_sum)
        acc_sq[...] = jnp.zeros_like(acc_sq)

    h = jnp.maximum(y_ref[...].astype(jnp.float32) * sc_ref[...] + sh_ref[...], 0.0)
    if valid_cols is not None:
        # Zero padded columns so they do not pollute the stage-2 batch stats.
        col = i * tile_r + jax.lax.broadcasted_iota(jnp.int32, h.shape, 1)
        h = jnp.where(col < valid_cols, h, 0.0)

    wb = w_ref[...].astype(jnp.bfloat16)
    y2 = jnp.dot(wb, h.astype(jnp.bfloat16), preferred_element_type=jnp.float32)
    o_ref[...] = y2.astype(o_ref.dtype)

    acc_sum[...] += jnp.sum(y2, axis=1, keepdims=True)
    acc_sq[...] += jnp.sum(y2 * y2, axis=1, keepdims=True)
    sum_ref[...] = acc_sum[...]
    sq_ref[...] = acc_sq[...]


def _bn_relu_residual_kernel(*refs, has_residual):
    """Final BN affine + ReLU, optionally fused residual add."""
    if has_residual:
        y_ref, sc_ref, sh_ref, res_ref, o_ref = refs
    else:
        y_ref, sc_ref, sh_ref, o_ref = refs
        res_ref = None
    h = jnp.maximum(y_ref[...].astype(jnp.float32) * sc_ref[...] + sh_ref[...], 0.0)
    if has_residual:
        h = h + res_ref[...].astype(jnp.float32)
    o_ref[...] = h.astype(o_ref.dtype)


# ----------------------------- pallas_call wrappers -------------------------- #
def _row_spec(rows, tile_r):
    return pl.BlockSpec((rows, tile_r), lambda i: (0, i))


def _const_spec(shape):
    return pl.BlockSpec(shape, lambda i: (0,) * len(shape))


def _conv_stats(x2d, w_mat, tile_r):
    kin, r_pad = x2d.shape
    cout = w_mat.shape[0]
    return pl.pallas_call(
        _conv_stats_kernel,
        grid=(r_pad // tile_r,),
        in_specs=[_row_spec(kin, tile_r), _const_spec((cout, kin))],
        out_specs=[_row_spec(cout, tile_r),
                   _const_spec((cout, 1)), _const_spec((cout, 1))],
        out_shape=[jax.ShapeDtypeStruct((cout, r_pad), jnp.float32),
                   jax.ShapeDtypeStruct((cout, 1), jnp.float32),
                   jax.ShapeDtypeStruct((cout, 1), jnp.float32)],
        scratch_shapes=[pltpu.VMEM((cout, 1), jnp.float32),
                        pltpu.VMEM((cout, 1), jnp.float32)],
        compiler_params=pltpu.CompilerParams(dimension_semantics=("arbitrary",)),
    )(x2d, w_mat)


def _bn_relu_conv_stats(y, w_mat, scale, shift, tile_r, *, valid_cols):
    c, r_pad = y.shape
    cout = w_mat.shape[0]
    kernel = functools.partial(_bn_relu_conv_stats_kernel,
                               valid_cols=valid_cols, tile_r=tile_r)
    return pl.pallas_call(
        kernel,
        grid=(r_pad // tile_r,),
        in_specs=[_row_spec(c, tile_r), _const_spec((cout, c)),
                  _const_spec((c, 1)), _const_spec((c, 1))],
        out_specs=[_row_spec(cout, tile_r),
                   _const_spec((cout, 1)), _const_spec((cout, 1))],
        out_shape=[jax.ShapeDtypeStruct((cout, r_pad), jnp.float32),
                   jax.ShapeDtypeStruct((cout, 1), jnp.float32),
                   jax.ShapeDtypeStruct((cout, 1), jnp.float32)],
        scratch_shapes=[pltpu.VMEM((cout, 1), jnp.float32),
                        pltpu.VMEM((cout, 1), jnp.float32)],
        compiler_params=pltpu.CompilerParams(dimension_semantics=("arbitrary",)),
    )(y, w_mat, scale, shift)


def _bn_relu_residual(y, scale, shift, residual, tile_r):
    c, r_pad = y.shape
    args = [y, scale, shift]
    in_specs = [_row_spec(c, tile_r), _const_spec((c, 1)), _const_spec((c, 1))]
    if residual is not None:
        args.append(residual)
        in_specs.append(_row_spec(c, tile_r))
    kernel = functools.partial(_bn_relu_residual_kernel,
                               has_residual=residual is not None)
    return pl.pallas_call(
        kernel,
        grid=(r_pad // tile_r,),
        in_specs=in_specs,
        out_specs=_row_spec(c, tile_r),
        out_shape=jax.ShapeDtypeStruct((c, r_pad), jnp.float32),
        compiler_params=pltpu.CompilerParams(dimension_semantics=("parallel",)),
    )(*args)


# ----------------------------- JAX glue -------------------------------------- #
def _bn_scale_shift(ssum, ssq, count, gamma, beta):
    """Fold BN(train) into a single per-channel scale/shift: y*scale + shift."""
    mean = ssum / count                                         # (C, 1)
    var = jnp.maximum(ssq / count - mean * mean, 0.0)           # biased, clamped
    inv = jax.lax.rsqrt(var + _BN_EPS)
    scale = gamma.reshape(-1, 1).astype(jnp.float32) * inv
    shift = beta.reshape(-1, 1).astype(jnp.float32) - mean * scale
    return scale, shift


def _plan_rows(r, row_tile):
    """Pick a lane tile width (multiple of 128) and the padded row count."""
    if row_tile is None:
        row_tile = 512     # fits comfortably in default scoped VMEM on v5e/v6e/v7x
    if r <= row_tile:
        return r, r        # single full-extent block; no 128-divisibility needed
    tr = max(128, (row_tile // 128) * 128)
    return tr, ((r + tr - 1) // tr) * tr


def _pad_cols(a, r_pad):
    r = a.shape[1]
    return a if r_pad == r else jnp.pad(a, ((0, 0), (0, r_pad - r)))


def _im2col_cm(x_nchw, k):
    """Channel-major im2col: (N,C,H,W) -> (K*K*C, N*Ho*Wo), row order (dy, dx, ci)."""
    n, c, h, w = x_nchw.shape
    ho, wo = h - k + 1, w - k + 1
    if k == 1:
        return jnp.transpose(x_nchw, (1, 0, 2, 3)).reshape(c, n * h * w), (n, ho, wo)
    cols = []
    for dy in range(k):
        for dx in range(k):
            cols.append(x_nchw[:, :, dy:dy + ho, dx:dx + wo])    # (N, C, Ho, Wo)
    patches = jnp.stack(cols, axis=0)                             # (K*K, N, C, Ho, Wo)
    patches = jnp.transpose(patches, (0, 2, 1, 3, 4)).reshape(k * k * c, n * ho * wo)
    return patches, (n, ho, wo)


def conv_bn_relu_stage(x_nchw, conv_weight, bn_weight, bn_bias, *, row_tile=None):
    """One fused conv(VALID, no bias) -> BatchNorm(train) -> ReLU stage. NCHW in/out."""
    n, c, h, w = x_nchw.shape
    cout, cin, k, _ = conv_weight.shape
    patches, (nb, ho, wo) = _im2col_cm(x_nchw, k)
    patches = patches.astype(jnp.bfloat16)          # halve HBM for the K^2-expanded slab
    r = nb * ho * wo
    tr, r_pad = _plan_rows(r, row_tile)
    patches = _pad_cols(patches, r_pad)
    # (Cout, Cin, kH, kW) -> (Cout, kH, kW, Cin) -> (Cout, K*K*Cin); matches im2col rows.
    w_mat = jnp.transpose(conv_weight, (0, 2, 3, 1)).reshape(cout, k * k * cin)
    w_mat = w_mat.astype(jnp.float32)

    y, ssum, ssq = _conv_stats(patches, w_mat, tr)
    scale, shift = _bn_scale_shift(ssum, ssq, r, bn_weight, bn_bias)
    out = _bn_relu_residual(y, scale, shift, None, tr)           # (Cout, r_pad) f32
    out = out[:, :r].reshape(cout, nb, ho, wo)
    return jnp.transpose(out, (1, 0, 2, 3))


def resblock2d_forward(x_nchw, conv_weight, bn_weight, bn_bias, *, row_tile=None):
    """Pallas implementation of ResBlock2D.forward (PyTorch NCHW in / NCHW out)."""
    n, c, h, w = x_nchw.shape
    cout, cin, k, k2 = conv_weight.shape
    assert (cout, cin, k) == (c, c, k2)
    if k != 1:
        raise ValueError(
            f"x0 + x shape mismatch: residual {(n, c, h, w)} vs branch "
            f"{(n, c, h - 2 * (k - 1), w - 2 * (k - 1))} "
            "(identical failure to the PyTorch module with padding=0).")

    r = n * h * w
    tr, r_pad = _plan_rows(r, row_tile)
    # Lane-dense channel-major layout: (C, N*H*W) with R on the 128-lane axis.
    x_flat = jnp.transpose(x_nchw, (1, 0, 2, 3)).reshape(c, r).astype(jnp.float32)
    x_pad = _pad_cols(x_flat, r_pad)
    w_mat = conv_weight.reshape(c, c).astype(jnp.float32)
    valid = None if r_pad == r else r

    # Pass 1: stage-1 conv + batch-stat accumulation.
    y1, s1, q1 = _conv_stats(x_pad, w_mat, tr)
    scale1, shift1 = _bn_scale_shift(s1, q1, r, bn_weight, bn_bias)
    # Pass 2: stage-1 BN+ReLU fused with stage-2 conv + stage-2 batch stats.
    y2, s2, q2 = _bn_relu_conv_stats(y1, w_mat, scale1, shift1, tr, valid_cols=valid)
    scale2, shift2 = _bn_scale_shift(s2, q2, r, bn_weight, bn_bias)
    # Pass 3: stage-2 BN+ReLU fused with the residual add.
    out = _bn_relu_residual(y2, scale2, shift2, x_pad, tr)

    out = out[:, :r].reshape(c, n, h, w)
    return jnp.transpose(out, (1, 0, 2, 3))


# ----------------------------- pure-JAX reference ---------------------------- #
def _reference_stage(x_nchw, conv_weight, bn_weight, bn_bias):
    y = jax.lax.conv_general_dilated(
        x_nchw, conv_weight, window_strides=(1, 1), padding="VALID",
        dimension_numbers=("NCHW", "OIHW", "NCHW"),
        precision=jax.lax.Precision.HIGHEST)
    mean = jnp.mean(y, axis=(0, 2, 3), keepdims=True)
    var = jnp.mean((y - mean) ** 2, axis=(0, 2, 3), keepdims=True)
    y = (y - mean) / jnp.sqrt(var + _BN_EPS)
    y = y * bn_weight.reshape(1, -1, 1, 1) + bn_bias.reshape(1, -1, 1, 1)
    return jnp.maximum(y, 0.0)


def _reference_forward(x_nchw, conv_weight, bn_weight, bn_bias):
    y = _reference_stage(x_nchw, conv_weight, bn_weight, bn_bias)
    y = _reference_stage(y, conv_weight, bn_weight, bn_bias)
    return x_nchw + y


# ----------------------------- demo ------------------------------------------ #
if __name__ == "__main__":
    num_channels = 4
    n, h, w = 2, 16, 16

    key = jax.random.PRNGKey(0)
    kx, kw, kg, kb, kw3, kx2 = jax.random.split(key, 6)
    x = jax.random.normal(kx, (n, num_channels, h, w), jnp.float32)
    conv_w1 = 0.3 * jax.random.normal(
        kw, (num_channels, num_channels, 1, 1), jnp.float32)
    bn_weight = 1.0 + 0.1 * jax.random.normal(kg, (num_channels,), jnp.float32)
    bn_bias = 0.1 * jax.random.normal(kb, (num_channels,), jnp.float32)

    # Full ResBlock2D forward (filter_size=1); row_tile=128 -> 4 row tiles exercised.
    out = resblock2d_forward(x, conv_w1, bn_weight, bn_bias, row_tile=128)
    out = jax.block_until_ready(out)
    ref = _reference_forward(x, conv_w1, bn_weight, bn_bias)
    assert out.shape == (n, num_channels, h, w)
    assert jnp.allclose(out, ref, atol=2e-2, rtol=2e-2), \
        float(jnp.max(jnp.abs(out - ref)))

    # Odd spatial size: R=324 is not a multiple of the 128-wide row tile, so this
    # exercises the padded-column masking path inside the fused BN+ReLU+conv pass.
    x_odd = jax.random.normal(kx2, (1, num_channels, 18, 18), jnp.float32)
    out_odd = jax.block_until_ready(
        resblock2d_forward(x_odd, conv_w1, bn_weight, bn_bias, row_tile=128))
    ref_odd = _reference_forward(x_odd, conv_w1, bn_weight, bn_bias)
    assert jnp.allclose(out_odd, ref_odd, atol=2e-2, rtol=2e-2), \
        float(jnp.max(jnp.abs(out_odd - ref_odd)))

    # Default filter_size=3: the two-stage residual add is shape-incompatible in
    # PyTorch itself, so exercise the fused conv+bn+relu stage on the 3x3 path.
    conv_w3 = 0.1 * jax.random.normal(
        kw3, (num_channels, num_channels, 3, 3), jnp.float32)
    s3 = jax.block_until_ready(
        conv_bn_relu_stage(x, conv_w3, bn_weight, bn_bias, row_tile=128))
    ref3 = _reference_stage(x, conv_w3, bn_weight, bn_bias)
    assert s3.shape == ref3.shape
    assert jnp.allclose(s3, ref3, atol=2e-2, rtol=2e-2), \
        float(jnp.max(jnp.abs(s3 - ref3)))

    print("KERNEL_OK")
</pallas_src>

<mosaic_0001>
module attributes {stable_mosaic.version = 11 : i64} {
  func.func @_conv_stats_kernel(%arg0: i32, %arg1: memref<4x128xf32, #tpu.memory_space<vmem>>, %arg2: memref<4x4xf32, #tpu.memory_space<vmem>>, %arg3: memref<4x128xf32, #tpu.memory_space<vmem>>, %arg4: memref<4x1xf32, #tpu.memory_space<vmem>>, %arg5: memref<4x1xf32, #tpu.memory_space<vmem>>, %arg6: memref<4x1xf32, #tpu.memory_space<vmem>>, %arg7: memref<4x1xf32, #tpu.memory_space<vmem>>) attributes {dimension_semantics = [#tpu.dimension_semantics<arbitrary>], iteration_bounds = array<i64: 4>, scalar_prefetch = 0 : i64, scratch_operands = 2 : i64, tpu.core_type = #tpu.core_type<tc>, window_params = [{transform_indices = @transform_0, window_bounds = array<i64: 4, 128>}, {pipeline_mode = #tpu.pipeline_mode<synchronous>, transform_indices = @transform_1, window_bounds = array<i64: 4, 4>}, {transform_indices = @transform_2, window_bounds = array<i64: 4, 128>}, {pipeline_mode = #tpu.pipeline_mode<synchronous>, transform_indices = @transform_3, window_bounds = array<i64: 4, 1>}, {pipeline_mode = #tpu.pipeline_mode<synchronous>, transform_indices = @transform_4, window_bounds = array<i64: 4, 1>}]} {
    %c0_i32 = arith.constant 0 : i32
    %0 = arith.cmpi eq, %arg0, %c0_i32 : i32
    %1 = arith.extui %0 : i1 to i32
    %c0_i32_0 = arith.constant 0 : i32
    %2 = arith.cmpi ne, %1, %c0_i32_0 : i32
    scf.if %2 {
      %cst_24 = arith.constant 0.000000e+00 : f32
      %24 = vector.broadcast %cst_24 : f32 to vector<4x1xf32>
      %c0_25 = arith.constant 0 : index
      %c0_26 = arith.constant 0 : index
      %25 = vector.load %arg6[%c0_25, %c0_26] : memref<4x1xf32, #tpu.memory_space<vmem>>, vector<4x1xf32>
      tpu.vector_store %arg6[%c0_25, %c0_26], %24 {strides = array<i32>} : memref<4x1xf32, #tpu.memory_space<vmem>>, vector<4x1xf32>,
      %cst_27 = arith.constant 0.000000e+00 : f32
      %26 = vector.broadcast %cst_27 : f32 to vector<4x1xf32>
      %c0_28 = arith.constant 0 : index
      %c0_29 = arith.constant 0 : index
      %27 = vector.load %arg7[%c0_28, %c0_29] : memref<4x1xf32, #tpu.memory_space<vmem>>, vector<4x1xf32>
      tpu.vector_store %arg7[%c0_28, %c0_29], %26 {strides = array<i32>} : memref<4x1xf32, #tpu.memory_space<vmem>>, vector<4x1xf32>,
    } else {
    }
    %c0 = arith.constant 0 : index
    %c0_1 = arith.constant 0 : index
    %3 = vector.load %arg1[%c0, %c0_1] : memref<4x128xf32, #tpu.memory_space<vmem>>, vector<4x128xf32>
    %4 = arith.truncf %3 : vector<4x128xf32> to vector<4x128xbf16>
    %c0_2 = arith.constant 0 : index
    %c0_3 = arith.constant 0 : index
    %5 = vector.load %arg2[%c0_2, %c0_3] : memref<4x4xf32, #tpu.memory_space<vmem>>, vector<4x4xf32>
    %6 = arith.truncf %5 : vector<4x4xf32> to vector<4x4xbf16>
    %cst = arith.constant dense<0.000000e+00> : vector<4x128xf32>
    %7 = tpu.matmul %6, %4, %cst {dimension_numbers = #tpu.dot_dimension_numbers<[1], [0], [0], [1], [0, 0, 1, 1], [], []>} : vector<4x4xbf16>, vector<4x128xbf16>, vector<4x128xf32> -> vector<4x128xf32>
    %c0_4 = arith.constant 0 : index
    %c0_5 = arith.constant 0 : index
    %8 = vector.load %arg3[%c0_4, %c0_5] : memref<4x128xf32, #tpu.memory_space<vmem>>, vector<4x128xf32>
    tpu.vector_store %arg3[%c0_4, %c0_5], %7 {strides = array<i32>} : memref<4x128xf32, #tpu.memory_space<vmem>>, vector<4x128xf32>,
    %c0_6 = arith.constant 0 : index
    %c0_7 = arith.constant 0 : index
    %9 = vector.load %arg6[%c0_6, %c0_7] : memref<4x1xf32, #tpu.memory_space<vmem>>, vector<4x1xf32>
    %cst_8 = arith.constant dense<0.000000e+00> : vector<4xf32>
    %10 = vector.multi_reduction <add>, %7, %cst_8 [1] : vector<4x128xf32> to vector<4xf32>
    %11 = vector.shape_cast %10 : vector<4xf32> to vector<4x1xf32>
    %12 = arith.addf %9, %11 : vector<4x1xf32>
    %c0_9 = arith.constant 0 : index
    %c0_10 = arith.constant 0 : index
    %13 = vector.load %arg6[%c0_9, %c0_10] : memref<4x1xf32, #tpu.memory_space<vmem>>, vector<4x1xf32>
    tpu.vector_store %arg6[%c0_9, %c0_10], %12 {strides = array<i32>} : memref<4x1xf32, #tpu.memory_space<vmem>>, vector<4x1xf32>,
    %c0_11 = arith.constant 0 : index
    %c0_12 = arith.constant 0 : index
    %14 = vector.load %arg7[%c0_11, %c0_12] : memref<4x1xf32, #tpu.memory_space<vmem>>, vector<4x1xf32>
    %15 = arith.mulf %7, %7 : vector<4x128xf32>
    %cst_13 = arith.constant dense<0.000000e+00> : vector<4xf32>
    %16 = vector.multi_reduction <add>, %15, %cst_13 [1] : vector<4x128xf32> to vector<4xf32>
    %17 = vector.shape_cast %16 : vector<4xf32> to vector<4x1xf32>
    %18 = arith.addf %14, %17 : vector<4x1xf32>
    %c0_14 = arith.constant 0 : index
    %c0_15 = arith.constant 0 : index
    %19 = vector.load %arg7[%c0_14, %c0_15] : memref<4x1xf32, #tpu.memory_space<vmem>>, vector<4x1xf32>
    tpu.vector_store %arg7[%c0_14, %c0_15], %18 {strides = array<i32>} : memref<4x1xf32, #tpu.memory_space<vmem>>, vector<4x1xf32>,
    %c0_16 = arith.constant 0 : index
    %c0_17 = arith.constant 0 : index
    %20 = vector.load %arg6[%c0_16, %c0_17] : memref<4x1xf32, #tpu.memory_space<vmem>>, vector<4x1xf32>
    %c0_18 = arith.constant 0 : index
    %c0_19 = arith.constant 0 : index
    %21 = vector.load %arg4[%c0_18, %c0_19] : memref<4x1xf32, #tpu.memory_space<vmem>>, vector<4x1xf32>
    tpu.vector_store %arg4[%c0_18, %c0_19], %20 {strides = array<i32>} : memref<4x1xf32, #tpu.memory_space<vmem>>, vector<4x1xf32>,
    %c0_20 = arith.constant 0 : index
    %c0_21 = arith.constant 0 : index
    %22 = vector.load %arg7[%c0_20, %c0_21] : memref<4x1xf32, #tpu.memory_space<vmem>>, vector<4x1xf32>
    %c0_22 = arith.constant 0 : index
    %c0_23 = arith.constant 0 : index
    %23 = vector.load %arg5[%c0_22, %c0_23] : memref<4x1xf32, #tpu.memory_space<vmem>>, vector<4x1xf32>
    tpu.vector_store %arg5[%c0_22, %c0_23], %22 {strides = array<i32>} : memref<4x1xf32, #tpu.memory_space<vmem>>, vector<4x1xf32>,
    return
  }
  func.func @transform_0(%arg0: i32) -> (i32, i32) {
    %c0_i32 = arith.constant 0 : i32
    %c0_i32_0 = arith.constant 0 : i32
    return %c0_i32, %arg0 : i32, i32
  }
  func.func @transform_1(%arg0: i32) -> (i32, i32) {
    %c0_i32 = arith.constant 0 : i32
    %c0_i32_0 = arith.constant 0 : i32
    %c0_i32_1 = arith.constant 0 : i32
    return %c0_i32, %c0_i32_0 : i32, i32
  }
  func.func @transform_2(%arg0: i32) -> (i32, i32) {
    %c0_i32 = arith.constant 0 : i32
    %c0_i32_0 = arith.constant 0 : i32
    return %c0_i32, %arg0 : i32, i32
  }
  func.func @transform_3(%arg0: i32) -> (i32, i32) {
    %c0_i32 = arith.constant 0 : i32
    %c0_i32_0 = arith.constant 0 : i32
    %c0_i32_1 = arith.constant 0 : i32
    return %c0_i32, %c0_i32_0 : i32, i32
  }
  func.func @transform_4(%arg0: i32) -> (i32, i32) {
    %c0_i32 = arith.constant 0 : i32
    %c0_i32_0 = arith.constant 0 : i32
    %c0_i32_1 = arith.constant 0 : i32
    return %c0_i32, %c0_i32_0 : i32, i32
  }
}

</mosaic_0001>

<bundles_post_ra>
// kernel: tpu_custom_call.1
= control target key start
LH: loop header
LB: loop body
LE: loop exit
PB: predicated region body
PF: predicated region fallthrough
CT: control target
= control target key end

     0   :  { %10 = vsyncpa [#allocation5], 0  ;;  %s858_s0 = inlined_call_operand.hbm [shape: f32[4,512], index: 0, kind: input, shape index: {}]   ;;  %s859_s1 = inlined_call_operand.hbm [shape: f32[4,4], index: 1, kind: input, shape index: {}]   ;;  %s860_s2 = inlined_call_operand.hbm [shape: f32[4,512], index: 2, kind: output, shape index: {0}]   ;;  %s861_s3 = inlined_call_operand.vmem [shape: f32[4,1], index: 3, kind: output, shape index: {1}]   ;;  %s862_s4 = inlined_call_operand.vmem [shape: f32[4,1], index: 4, kind: output, shape index: {2}]  }
   0x1   :  { %12 = vsyncpa [#allocation5 + $0x1], 0 }
   0x2   :  { %13 = vsyncpa [#allocation8], 0 }
   0x3   :  { %14 = vsyncpa [#allocation6], 0 }
   0x4   :  { %16 = vsyncpa [#allocation6 + $0x1], 0  ;;  %s652_s15 = smov 0   ;;  %s654_s16 = smov 0  }
   0x5   :  { %s656_s17 = smov 0   ;;  %s658_s18 = smov 0  }
   0x6 LB: > { %s673_s19 = sadd.s32 4294967295, %s619_s18   ;;  %s407_s20 = sadd.s32 4294967294, %s619_s18   ;;  %s619_s18 = sphi %s658_s18, %s886_s18   ;;  %s615_s17 = sphi %s656_s17, %s885_s17   ;;  %s611_s16 = sphi %s654_s16, %s884_s16   ;;  %s607_s15 = sphi %s652_s15, %s883_s15  }
   0x7   : > { %p42_p0 = scmp.ne.s32.totalorder %s611_s16, %s607_s15  ;;  %p863_p1 = scmp.eq.s32.totalorder %s673_s19, 0 }
   0x8   : > { %p93_p3 = scmp.eq.s32.totalorder %s407_s20, 3  ;;  %p408_p5 = scmp.ge.s32.totalorder %s619_s18, 1 }
   0x9   : > { %p682_p4 = por %p863_p1, %p42_p0  ;;  %p142_p7 = scmp.lt.s32.totalorder %s619_s18, 5 }
   0xa   : > { %p687_p6 = por %p93_p3, %p42_p0  ;;  %s621_s24 = smov [#allocation7]  }
   0xb   : > { %s866_s21 = scalar_select %p682_p4, 1, 0 }
   0xc   : > { %s867_s22 = scalar_select %p687_p6, 1, 0 }
   0xd   : > { %p693_p9 = pnand %p408_p5, %p142_p7  ;;  %s155_s25 = sshll.u32 %s621_s24, 4  ;;  %s156_s25 = int_to_ptr.vmem [resolvable:$true] %s155_s25 }
   0xe   : > { %s700_s26 = sadd.s32 1, %s619_s18   ;;  %s29_s30 = sadd.s32 1, %s615_s17 }
   0xf   : > { %s868_s23 = scalar_select %p693_p9, 1, 0 }
  0x10   : > { %p439_p10 = pneg %p693_p9  ;;  %s26_s28 = ssub.s32 %s619_s18, %s700_s26 }
  0x11   : > { %p710_p12 = scmp.eq.s32.totalorder %s26_s28, 0  ;;  %s491_s7 = scalar_lea.hbm %s859_s1, 64 }
  0x12   : > { %p704_p11 = pnand %p439_p10, %p863_p1  ;;  %p492_p0 = scmp.ne.s32.totalorder %s859_s1, %s491_s7 }
  0x13   : > { %s870_s29 = scalar_select %p710_p12, 1, 0 }
  0x14   : > { %p493_p3 = pneg %p704_p11  ;;  %p498_p10 = scmp.lt.u32.totalorder %s491_s7, %s859_s1 }
  0x16   : > { %p494_p5 = pnand %p493_p3, %p492_p0 }
  0x18   : > { %p495_p7 = pneg %p494_p5 }
  0x1a   : > { %p500_p8 = pnand %p498_p10, %p495_p7 }
  0x1c   : > { %503 = shalt.err (!%p500_p8)
}
  0x1d   : > { %s504_s12 = scalar_lea.vmem %s156_s25, 64  ;;  %p512_p6 = scmp.lt.s32.totalorder %s156_s25, %s156_s25 }
  0x1e   : > { %p505_p1 = scmp.ne.s32.totalorder %s156_s25, %s504_s12  ;;  %p513_p4 = scmp.lt.s32.totalorder %s504_s12, %s504_s12 }
  0x20   : > { %p507_p2 = pnand %p505_p1, %p493_p3  ;;  %p514_p9 = por %p513_p4, %p512_p6 }
  0x22   : > { %p508_p13 = pneg %p507_p2 }
  0x24   : > { %p515_p12 = pnand %p514_p9, %p508_p13 }
  0x26   : > { %518 = shalt.err (!%p515_p12)
}
  0x27   : > { %442 = dma.hbm_to_vmem [thread:$0]  (!%p704_p11), %s859_s1, 64, %s156_s25, [#allocation8]  }
  0x28   : > { %p871_p1 = scmp.ne.s32.totalorder %s870_s29, 0  ;;  %p37_p2 = scmp.eq.s32.totalorder %s619_s18, 0 }
  0x29   : > { %p872_p4 = scmp.ne.s32.totalorder %s615_s17, %s611_s16  ;;  %p873_p6 = scmp.eq.s32.totalorder %s673_s19, 3 }
  0x2a   : > { %s736_s20 = scalar_select %p871_p1, %s615_s17, %s29_s30  }
  0x2b   : > { %p744_p8 = por %p873_p6, %p872_p4  ;;  %p452_p9 = scmp.lt.s32.totalorder %s619_s18, 4 }
  0x2c   : > { %s166_s27 = sand.u32 1, %s615_s17   ;;  %p875_p12 = pmov %p872_p4 }
  0x2d   : > { %s411_s28 = sshll.u32 %s166_s27, 2  ;;  %s412_s5 = sshll.u32 %s619_s18, 6 }
  0x2e   : > { %p38_p13 = por %p37_p2, %p875_p12  ;;  %s757_s25 = scalar_lea.hbm %s858_s0, %s412_s5 }
  0x2f   : > { %s170_s29 = scalar_lea.vmem [#allocation4], %s411_s28  ;;  %s167_s9 = scalar_lea.sflag [#allocation5], %s166_s27 }
  0x30   : > { %s177_s30 = sshll.u32 %s170_s29, 4  ;;  %p759_p11 = pnand %p452_p9, %p38_p13  ;;  %s763_s30 = int_to_ptr.vmem [resolvable:$true] %s177_s30 }
  0x31   : > { %s519_s10 = scalar_lea.hbm %s757_s25, 64  ;;  %s524_s13 = scalar_lea.hbm %s858_s0, 256 }
  0x32   : > { %p520_p0 = scmp.ne.s32.totalorder %s757_s25, %s519_s10  ;;  %p521_p3 = pneg %p759_p11 }
  0x33   : > { %p525_p10 = scmp.lt.u32.totalorder %s757_s25, %s858_s0  ;;  %p526_p1 = scmp.lt.u32.totalorder %s524_s13, %s519_s10 }
  0x34   : > { %p522_p5 = pnand %p521_p3, %p520_p0  ;;  %p528_p4 = scmp.lt.u32.totalorder %s519_s10, %s757_s25 }
  0x35   : > { %p527_p2 = por %p526_p1, %p525_p10 }
  0x36   : > { %p523_p7 = pneg %p522_p5 }
  0x37   : > { %p529_p6 = por %p528_p4, %p527_p2 }
  0x39   : > { %p530_p9 = pnand %p529_p6, %p523_p7 }
  0x3b   : > { %533 = shalt.err (!%p530_p9)
}
  0x3c   : > { %s534_s27 = scalar_lea.vmem %s763_s30, 64  ;;  %s622_s5 = smov [#allocation4]  }
  0x3d   : > { %p535_p12 = scmp.ne.s32.totalorder %s763_s30, %s534_s27  ;;  %s539_s6 = sshll.u32 %s622_s5, 4  ;;  %s540_s6 = int_to_ptr.vmem [resolvable:$false] %s539_s6 }
  0x3e   : > { %s541_s7 = scalar_lea.vmem %s540_s6, 128  ;;  %p542_p5 = scmp.lt.s32.totalorder %s763_s30, %s540_s6 }
  0x3f   : > { %p537_p13 = pnand %p535_p12, %p521_p3  ;;  %p543_p10 = scmp.lt.s32.totalorder %s541_s7, %s534_s27 }
  0x41   : > { %p538_p0 = pneg %p537_p13  ;;  %p544_p1 = por %p543_p10, %p542_p5 }
  0x43   : > { %p545_p2 = pnand %p544_p1, %p538_p0 }
  0x45   : > { %548 = shalt.err (!%p545_p2)
}
  0x46   : > { %446 = dma.hbm_to_vmem [thread:$0]  (!%p759_p11), %s757_s25, 64, %s763_s30, %s167_s9  }
  0x47   : > { %p877_p7 = scmp.ne.s32.totalorder %s868_s23, 0 }
  0x48   : > { %s793_s29 = sand.u32 (!%p877_p7), 1, %s611_s16   ;;  %p878_p3 = scmp.ne.s32.totalorder (!%p877_p7), %s866_s21, 0 }
  0x49   : > { %186 = sbr.rel (%p877_p7) target bundleno = 470 (0x1d6), region = 28  ;;  %s414_s10 = sshll.u32 (!%p877_p7), %s793_s29, 2 }
  0x4a   : > { %s189_s11 = scalar_lea.sflag (!%p877_p7), [#allocation5], %s793_s29  ;;  %s192_s12 = scalar_lea.vmem (!%p877_p7), [#allocation4], %s414_s10 }
  0x50   : > { %594 = dma.done.wait (%p878_p3), %s189_s11, 64  }
  0x51   : > { %596 = vsyncadd (%p878_p3), %s189_s11, 4294967232  ;;  %p879_p4 = scmp.eq.s32.totalorder %s673_s19, 0 }
  0x53   : > { %598 = dma.done.wait (%p879_p4), [#allocation8], 64   ;;  %p880_p11 = pmov %p879_p4 }
  0x54   : > { %s805_s23 = scalar_lea.vmem [#allocation9], %s414_s10  ;;  %p881_p6 = scmp.ne.s32.totalorder %s673_s19, 0 }
  0x55   : > { %600 = vsyncadd (%p880_p11), [#allocation8], 4294967232  ;;  %vm226_vm0 = vcmask (!%p881_p6), 3072   ;;  %v623_v0 = vmov (!%p881_p6), 0.0  }
  0x56   : > { %225 = sbr.rel (%p881_p6) target bundleno = 93 (0x5d), region = 40  ;;  %227 = vst.msk [vmem:[#allocation2] sm:$0xf] (!%p881_p6), %vm226_vm0, %v623_v0  ;;  %228 = vst.msk [vmem:[#allocation3] sm:$0xf] (!%p881_p6), %vm226_vm0, %v623_v0 }
  0x5d PF: > { %v229_v1 = vld [vmem:[%s192_s12] sm:$0xf]  ;;  %vm237_vm1 = vcmask 1041408   ;;  %v624_v2 = vmov 0.0   ;;  %vm625_vm2 = vmmov 0   ;;  %vm233_vm3 = vcmask 31744  }
  0x5e   : > { %425 = vmatprep.subr.bf16.mxu0 %v624_v2  ;;  %v230_v3 = vpack.c.bf16 %v229_v1, %v229_v1  ;;  %427 = vmatprep.mubr.msk.bf16.mxu0 %vm625_vm2, %v624_v2  ;;  %v231_v4 = vld [vmem:[#allocation7] sm:$0xf]  ;;  %vm283_vm4 = vcmask 1043456   ;;  %s420_s21 = sshll.u32 %s673_s19, 6  ;;  %s315_s25 = sshll.u32 %s805_s23, 4  ;;  %s316_s25 = int_to_ptr.vmem [resolvable:$true] %s315_s25 }
  0x5f   : > { %v232_v6 = vpack.c.bf16 %v231_v4, %v231_v4  ;;  %s815_s9 = scalar_lea.hbm %s860_s2, %s420_s21  ;;  %s302_s13 = scalar_lea.sflag [#allocation6], %s793_s29 }
  0x60   : > { %v239_v5 = vsel %vm237_vm1, %v230_v3, 0  ;;  %s549_s14 = scalar_lea.vmem %s316_s25, 64  ;;  %s626_s28 = smov [#allocation9]  }
  0x61   : > { %426 = vmatpush3.bf16.msra.mxu0 %v239_v5  ;;  %p550_p9 = scmp.ne.s32.totalorder %s316_s25, %s549_s14  ;;  %s553_s27 = sshll.u32 %s626_s28, 4  ;;  %s554_s27 = int_to_ptr.vmem [resolvable:$false] %s553_s27 }
  0x62   : > { %s555_s5 = scalar_lea.vmem %s554_s27, 128  ;;  %p556_p0 = scmp.lt.s32.totalorder %s316_s25, %s554_s27 }
  0x63   : > { %p551_p12 = pnand %p550_p9, %p744_p8  ;;  %p557_p5 = scmp.lt.s32.totalorder %s555_s5, %s549_s14 }
  0x64   : > { %428 = vmatmul.mubr.msk.bf16.vlgmr.msra.gmra.mrb[0].mxu0 %vm233_vm3, %v232_v6 }
  0x65   : > { %p552_p13 = pneg %p551_p12  ;;  %p558_p10 = por %p557_p5, %p556_p0 }
  0x67   : > { %p559_p1 = pnand %p558_p10, %p552_p13 }
 0x137   : > { %v275_v7 = vpop.f32.mrb[0].mxu0 }
 0x138   : > { %281 = vst [vmem:[%s805_s23] sm:$0xf] %v275_v7  ;;  %v429_v8 = vpop.f32.mrb[1].mxu0  ;;  %v284_v9 = vsel %vm283_vm4, %v275_v7, 0.0  ;;  %v291_v10 = vmul.f32 %v275_v7, %v275_v7 }
 0x139   : > { %285 = vadd.xlane.f32.xlu0 %v284_v9  ;;  %v278_v11 = vpop.f32.mrb[2].mxu0 }
 0x13a   : > { %v430_v12 = vpop.f32.mrb[3].mxu0  ;;  %v292_v13 = vsel %vm283_vm4, %v291_v10, 0.0 }
 0x13d   : > { %293 = vadd.xlane.f32.xlu0 %v292_v13 }
 0x13e   : > { %562 = shalt.err (!%p559_p1)
}
 0x13f   : > { %s563_s19 = scalar_lea.hbm %s815_s9, 64  ;;  %s567_s29 = scalar_lea.hbm %s860_s2, 256 }
 0x140   : > { %p564_p2 = scmp.ne.s32.totalorder %s815_s9, %s563_s19  ;;  %p568_p4 = scmp.lt.u32.totalorder %s815_s9, %s860_s2 }
 0x141   : > { %p569_p11 = scmp.lt.u32.totalorder %s567_s29, %s563_s19  ;;  %p571_p9 = scmp.lt.u32.totalorder %s563_s19, %s815_s9 }
 0x142   : > { %p565_p7 = pnand %p564_p2, %p744_p8 }
 0x143   : > { %p570_p6 = por %p569_p11, %p568_p4 }
 0x144   : > { %p566_p3 = pneg %p565_p7 }
 0x145   : > { %p572_p12 = por %p571_p9, %p570_p6 }
 0x147   : > { %p573_p13 = pnand %p572_p12, %p566_p3 }
 0x149   : > { %576 = shalt.err (!%p573_p13)
}
 0x14a   : > { %437 = dma.vmem_to_hbm [thread:$0]  (%p744_p8), %s316_s25, 64, %s815_s9, %s302_s13   ;;  %v282_v14 = vld [vmem:[#allocation2] sm:$0xf]  ;;  %vm288_vm5 = vcmask 3072   ;;  %v290_v17 = vld [vmem:[#allocation3] sm:$0xf] }
 0x1c6   : > { %v286_v15 = vpop.xlane.xlu0 %285 }
 0x1c7   : > { %v287_v16 = vadd.f32 %v286_v15, %v282_v14 }
 0x1c9   : > { %289 = vst.msk [vmem:[#allocation2] sm:$0xf] %vm288_vm5, %v287_v16 }
 0x1ca   : > { %v294_v18 = vpop.xlane.xlu0 %293 }
 0x1cb   : > { %v295_v19 = vadd.f32 %v294_v18, %v290_v17 }
 0x1cd   : > { %296 = vst.msk [vmem:[#allocation3] sm:$0xf] %vm288_vm5, %v295_v19 }
 0x1d0   : > { %v297_v20 = vld [vmem:[#allocation2] sm:$0xf] }
 0x1d1   : > { %298 = vst.msk [vmem:[%s861_s3] sm:$0xf] %vm288_vm5, %v297_v20 }
 0x1d4   : > { %v299_v21 = vld [vmem:[#allocation3] sm:$0xf] }
 0x1d5   : > { %300 = vst.msk [vmem:[%s862_s4] sm:$0xf] %vm288_vm5, %v299_v21 }
 0x1d6 PF: > { %p454_p8 = scmp.ge.s32.totalorder %s619_s18, 2  ;;  %s339_s24 = sand.u32 1, %s607_s15  }
 0x1d7   : > { %p882_p0 = scmp.ne.s32.totalorder %s867_s22, 0  ;;  %s340_s25 = scalar_lea.sflag [#allocation6], %s339_s24 }
 0x1d9   : > { %p448_p5 = pnand %p454_p8, %p882_p0 }
 0x1db   : > { %602 = dma.done.wait (!%p448_p5), %s340_s25, 64  }
 0x1dc   : > { %604 = vsyncadd (!%p448_p5), %s340_s25, 4294967232  ;;  %p19_p10 = scmp.ge.s32.totalorder %s700_s26, 6   ;;  %s883_s15 = smov %s611_s16 }
 0x1dd   : > { %s884_s16 = smov %s615_s17  ;;  %s885_s17 = smov %s736_s20 }
 0x1de   : > { %s886_s18 = smov %s700_s26  ;;  %21 = sbr.rel (!%p19_p10) target bundleno = 6 (0x6), region = 97 }
 0x1e5   :  { %345 = vsyncpa [#allocation5], 1 }
 0x1e6   :  { %347 = vsyncpa [#allocation5 + $0x1], 1 }
 0x1e7   :  { %348 = vsyncpa [#allocation8], 1 }
 0x1e8   :  { %349 = vsyncpa [#allocation6], 1 }
 0x1e9   :  { %351 = vsyncpa [#allocation6 + $0x1], 1 }

</bundles_post_ra>
